<compile_context>
chip_gen: v6e
topology: v6e:2x2x1
jax: 0.10.0
libtpu: 0.0.40
codegen_flags: <defaults>
</compile_context>

<pallas_src>
import jax
import jax.numpy as jnp
from jax.experimental import pallas as pl
from jax.experimental.pallas import tpu as pltpu


def _add_pe_kernel(pe_ref, x_ref, o_ref):
    # pe_ref: (1, TL) f32   x_ref / o_ref: (TB, TL) x.dtype
    # f32 accumulation, sublane-broadcast of the pe row over the batch rows.
    o_ref[...] = (x_ref[...].astype(jnp.float32) + pe_ref[...]).astype(o_ref.dtype)


def _sublane_quantum(dtype):
    return {4: 8, 2: 16, 1: 32}.get(jnp.dtype(dtype).itemsize, 8)


def _pick_block(dim, cap, quantum):
    """Largest block <= cap: either the full dim, or a multiple of `quantum`
    (preferring one that divides dim evenly so no partial blocks are needed)."""
    if dim <= cap:
        return dim
    t = (cap // quantum) * quantum
    cand = t
    while cand >= quantum:
        if dim % cand == 0:
            return cand
        cand -= quantum
    return t  # partial last block; Pallas masks out-of-bounds rows/lanes


def positional_encoder(x, dts, *, lane_cap=8192, bypass_bytes=256 * 1024,
                       donate_x=False):
    """x: (B, S, D), dts: (1, S, 1). Returns x + positional encoding (eval mode)."""
    B, S, D = x.shape
    assert dts.shape == (1, S, 1)
    itemsize = jnp.dtype(x.dtype).itemsize

    # --- O(S) batch-invariant precompute, f32 accumulation ---------------------
    dts_vec = dts.reshape(S).astype(jnp.float32)
    rev = jnp.flip(jnp.cumsum(jnp.flip(dts_vec)))                    # rev[t] = sum_{u>=t} dts[u]
    pe = jnp.concatenate([rev[1:], jnp.zeros((1,), jnp.float32)])    # pe[t]=rev[t+1], pe[S-1]=0

    # --- small-problem bypass: launch overhead would dominate ------------------
    if B * S * D * itemsize < bypass_bytes:
        out = (x.astype(jnp.float32) + pe[None, :, None]).astype(x.dtype)
        return out

    # --- lane-dense 2-D view of x ----------------------------------------------
    SD = S * D
    x2 = x.reshape(B, SD)
    pe_flat = jnp.repeat(pe, D).reshape(1, SD)                       # (1, S*D), stays f32

    # dtype-aware blocking: keep x tiles around ~4 MiB, sublane-quantum aligned
    sq = _sublane_quantum(x.dtype)
    row_cap = 128 * (4 // itemsize) if itemsize in (1, 2, 4) else 128
    tb = _pick_block(B, row_cap, sq)       # batch rows per tile (sublanes)
    tl = _pick_block(SD, lane_cap, 128)    # flattened seq*d_model lanes per tile

    nb, nl = pl.cdiv(B, tb), pl.cdiv(SD, tl)
    if nb * nl < 2:
        # guarantee >=2 grid steps so v7x megacore sharding has work to split
        if SD >= 2 * 128:
            tl = _pick_block(SD, max(128, (SD // 2) // 128 * 128), 128)
        elif B >= 2 * sq:
            tb = _pick_block(B, max(sq, (B // 2) // sq * sq), sq)
        nb, nl = pl.cdiv(B, tb), pl.cdiv(SD, tl)

    # explicit scoped-VMEM budget: double-buffered x + out tiles + pe row,
    # with headroom; capped so it is safe on every generation (v7x: 64 MiB phys)
    tile_bytes = tb * tl * itemsize
    pe_bytes = tl * 4
    needed = 2 * (2 * tile_bytes) + 2 * pe_bytes
    vmem_limit = min(max(int(needed * 1.5) + (2 << 20), 16 << 20), 32 << 20)

    # grid = (lane, batch) with batch innermost -> pe block index constant across
    # consecutive steps, so its (1, tl) row is only re-fetched when j changes.
    grid = (nl, nb)

    kwargs = {}
    if donate_x:
        kwargs["input_output_aliases"] = {1: 0}   # out aliases x2 when x is donated

    out2 = pl.pallas_call(
        _add_pe_kernel,
        out_shape=jax.ShapeDtypeStruct((B, SD), x.dtype),
        grid_spec=pltpu.PrefetchScalarGridSpec(
            num_scalar_prefetch=0,
            grid=grid,
            in_specs=[
                pl.BlockSpec((1, tl), lambda j, i: (0, j)),    # pe row (f32), shared over batch
                pl.BlockSpec((tb, tl), lambda j, i: (i, j)),   # x tile
            ],
            out_specs=pl.BlockSpec((tb, tl), lambda j, i: (i, j)),
        ),
        compiler_params=pltpu.CompilerParams(
            dimension_semantics=("parallel", "parallel"),
            vmem_limit_bytes=vmem_limit),
        **kwargs,
    )(pe_flat, x2)

    # nn.Dropout(p=0.1) is identity in eval mode — reproduced here.
    # TODO(synk): training-mode stochastic dropout (pltpu.prng_seed/prng_random_bits)
    #             not implemented (eval semantics only).
    return out2.reshape(B, S, D)


def _reference(x, dts):
    """Pure-JAX mirror of the torch forward (eval mode)."""
    B, S, D = x.shape
    t_rel = jnp.flip(jnp.cumsum(jnp.flip(dts, 1), axis=1), 1)        # (1, S, 1)
    t_rel = jnp.tile(t_rel, (1, 1, D))                               # (1, S, D)
    pe_ref = jnp.zeros((1, S, D), x.dtype).at[0, :-1, :].set(t_rel[0, 1:, :].astype(x.dtype))
    return x + pe_ref


if __name__ == "__main__":
    key = jax.random.PRNGKey(0)

    # Case 1: module-default sizes (max_seq_len=100, d_model=512) — exercises
    # the Pallas kernel path (above the small-problem bypass threshold).
    B, S, D = 2, 100, 512
    kx, kd, key = jax.random.split(key, 3)
    x = jax.random.normal(kx, (B, S, D), dtype=jnp.float32)
    dts = jax.random.uniform(kd, (1, S, 1), dtype=jnp.float32)
    out = jax.block_until_ready(positional_encoder(x, dts))
    ref = _reference(x, dts)
    assert jnp.allclose(out, ref, atol=1e-5, rtol=1e-5), "mismatch vs reference (pallas path)"

    # Case 2: tiny shape — takes the small-problem bypass (fused jnp add).
    B2, S2, D2 = 2, 8, 32
    kx2, kd2, key = jax.random.split(key, 3)
    x2 = jax.random.normal(kx2, (B2, S2, D2), dtype=jnp.float32)
    dts2 = jax.random.uniform(kd2, (1, S2, 1), dtype=jnp.float32)
    out2 = jax.block_until_ready(positional_encoder(x2, dts2))
    ref2 = _reference(x2, dts2)
    assert jnp.allclose(out2, ref2, atol=1e-5, rtol=1e-5), "mismatch vs reference (bypass path)"

    print("KERNEL_OK")
</pallas_src>

<mosaic_0001>
module attributes {stable_mosaic.version = 11 : i64} {
  func.func @_add_pe_kernel(%arg0: i32, %arg1: i32, %arg2: memref<1x6400xf32, #tpu.memory_space<vmem>>, %arg3: memref<2x6400xf32, #tpu.memory_space<vmem>>, %arg4: memref<2x6400xf32, #tpu.memory_space<vmem>>) attributes {dimension_semantics = [#tpu.dimension_semantics<parallel>, #tpu.dimension_semantics<parallel>], iteration_bounds = array<i64: 8, 1>, scalar_prefetch = 0 : i64, scratch_operands = 0 : i64, tpu.core_type = #tpu.core_type<tc>, window_params = [{transform_indices = @transform_0, window_bounds = array<i64: 1, 6400>}, {transform_indices = @transform_1, window_bounds = array<i64: 2, 6400>}, {transform_indices = @transform_2, window_bounds = array<i64: 2, 6400>}]} {
    %c0 = arith.constant 0 : index
    %c0_0 = arith.constant 0 : index
    %0 = vector.load %arg3[%c0, %c0_0] : memref<2x6400xf32, #tpu.memory_space<vmem>>, vector<2x6400xf32>
    %c0_1 = arith.constant 0 : index
    %c0_2 = arith.constant 0 : index
    %1 = vector.load %arg2[%c0_1, %c0_2] : memref<1x6400xf32, #tpu.memory_space<vmem>>, vector<1x6400xf32>
    %2 = vector.broadcast %1 : vector<1x6400xf32> to vector<2x6400xf32>
    %3 = arith.addf %0, %2 : vector<2x6400xf32>
    %c0_3 = arith.constant 0 : index
    %c0_4 = arith.constant 0 : index
    %4 = vector.load %arg4[%c0_3, %c0_4] : memref<2x6400xf32, #tpu.memory_space<vmem>>, vector<2x6400xf32>
    tpu.vector_store %arg4[%c0_3, %c0_4], %3 {strides = array<i32>} : memref<2x6400xf32, #tpu.memory_space<vmem>>, vector<2x6400xf32>,
    return
  }
  func.func @transform_0(%arg0: i32, %arg1: i32) -> (i32, i32) {
    %c0_i32 = arith.constant 0 : i32
    %c0_i32_0 = arith.constant 0 : i32
    return %c0_i32, %arg0 : i32, i32
  }
  func.func @transform_1(%arg0: i32, %arg1: i32) -> (i32, i32) {
    %c0_i32 = arith.constant 0 : i32
    return %arg1, %arg0 : i32, i32
  }
  func.func @transform_2(%arg0: i32, %arg1: i32) -> (i32, i32) {
    %c0_i32 = arith.constant 0 : i32
    return %arg1, %arg0 : i32, i32
  }
}

</mosaic_0001>

<bundles_post_ra>
// kernel: tpu_custom_call.1
= control target key start
LH: loop header
LB: loop body
LE: loop exit
PB: predicated region body
PF: predicated region fallthrough
CT: control target
= control target key end

     0   :  { %7 = vsyncpa [#allocation3], 0  ;;  %s1370_s0 = inlined_call_operand.hbm [shape: f32[1,51200], index: 0, kind: input, shape index: {}]   ;;  %s1371_s1 = inlined_call_operand.hbm [shape: f32[2,51200], index: 1, kind: input, shape index: {}]   ;;  %s1372_s2 = inlined_call_operand.hbm [shape: f32[2,51200], index: 2, kind: output, shape index: {}]  }
   0x1   :  { %9 = vsyncpa [#allocation3 + $0x1], 0 }
   0x2   :  { %10 = vsyncpa [#allocation6], 0 }
   0x3   :  { %12 = vsyncpa [#allocation6 + $0x1], 0 }
   0x4   :  { %13 = vsyncpa [#allocation4], 0 }
   0x5   :  { %15 = vsyncpa [#allocation4 + $0x1], 0  ;;  %s1067_s9 = smov 0   ;;  %s1069_s10 = smov 0  }
   0x6   :  { %s1071_s11 = smov 0   ;;  %s1073_s12 = smov 0  }
   0x7   :  { %s1075_s13 = smov 0   ;;  %s1077_s14 = smov 0  }
   0x8 LB: > { %s821_s15 = sadd.s32 4294967295, %s1046_s14   ;;  %s822_s16 = sadd.s32 4294967294, %s1046_s14   ;;  %s1046_s14 = sphi %s1077_s14, %s21_s14   ;;  %s1042_s13 = sphi %s1075_s13, %s1383_s13   ;;  %s1038_s12 = sphi %s1073_s12, %s1382_s12   ;;  %s1034_s11 = sphi %s1071_s11, %s1381_s11   ;;  %s1030_s10 = sphi %s1069_s10, %s1380_s10   ;;  %s1026_s9 = sphi %s1067_s9, %s1379_s9  }
   0x9   : > { %s33_s17 = sadd.s32 1, %s1042_s13  ;;  %s40_s18 = sadd.s32 1, %s1034_s11 }
   0xa   : > { %p35_p0 = scmp.ge.s32.totalorder %s33_s17, 8  ;;  %p47_p1 = scmp.ne.s32.totalorder %s1034_s11, %s1030_s10 }
   0xb   : > { %p48_p2 = scmp.eq.s32.totalorder %s1046_s14, 0  ;;  %p53_p3 = scmp.ne.s32.totalorder %s1030_s10, %s1026_s9 }
   0xc   : > { %s1385_s17 = smov (%p35_p0, %s33_s17), 0  ;;  %p54_p5 = scmp.eq.s32.totalorder %s821_s15, 0 }
   0xd   : > { %p1108_p4 = por %p48_p2, %p47_p1  ;;  %s37_s20 = ssub.s32 %s1042_s13, %s1385_s17 }
   0xe   : > { %p107_p6 = scmp.eq.s32.totalorder %s821_s15, 7  ;;  %p38_p7 = scmp.eq.s32.totalorder %s37_s20, 0 }
   0xf   : > { %p1114_p8 = por %p54_p5, %p53_p3  ;;  %p113_p10 = scmp.eq.s32.totalorder %s822_s16, 7 }
  0x10   : > { %p1118_p9 = por %p107_p6, %p47_p1  ;;  %p855_p12 = scmp.lt.s32.totalorder %s1046_s14, 8 }
  0x11   : > { %s1123_s23 = scalar_select %p38_p7, %s1034_s11, %s40_s18  }
  0x12   : > { %p1125_p11 = por %p113_p10, %p53_p3  ;;  %s1131_s25 = sand.u32 1, %s1034_s11  }
  0x13   : > { %s834_s26 = smul.u32 50, %s1131_s25  ;;  %p1137_p13 = pnand %p855_p12, %p1108_p4 }
  0x14   : > { %s831_s27 = smul.u32 800, %s1042_s13  ;;  %p827_p0 = scmp.ge.s32.totalorder %s1046_s14, 1 }
  0x15   : > { %s137_s4 = scalar_lea.vmem [#allocation2], %s834_s26  ;;  %s134_s6 = scalar_lea.sflag [#allocation3], %s1131_s25 }
  0x16   : > { %s143_s3 = scalar_lea.hbm %s1370_s0, %s831_s27  ;;  %s145_s5 = sshll.u32 %s137_s4, 4  ;;  %s146_s5 = int_to_ptr.vmem [resolvable:$true] %s145_s5 }
  0x17   : > { %p908_p1 = pneg %p1137_p13  ;;  %s919_s7 = scalar_lea.vmem %s146_s5, 800 }
  0x18   : > { %p920_p2 = scmp.ne.s32.totalorder %s146_s5, %s919_s7  ;;  %s1048_s8 = smov [#allocation2]  }
  0x19   : > { %s924_s15 = sshll.u32 %s1048_s8, 4  ;;  %s925_s15 = int_to_ptr.vmem [resolvable:$false] %s924_s15 }
  0x1a   : > { %p922_p3 = pnand %p920_p2, %p908_p1  ;;  %s926_s16 = scalar_lea.vmem %s925_s15, 1600 }
  0x1b   : > { %p927_p5 = scmp.lt.s32.totalorder %s146_s5, %s925_s15  ;;  %p928_p6 = scmp.lt.s32.totalorder %s926_s16, %s919_s7 }
  0x1c   : > { %p923_p4 = pneg %p922_p3 }
  0x1d   : > { %p929_p7 = por %p928_p6, %p927_p5 }
  0x1f   : > { %p930_p10 = pnand %p929_p7, %p923_p4 }
  0x21   : > { %933 = shalt.err (!%p930_p10)
}
  0x22   : > { %847 = dma.hbm_to_vmem [thread:$0]  (!%p1137_p13), %s143_s3, 800, %s146_s5, %s134_s6  }
  0x23   : > { %p171_p12 = scmp.lt.s32.totalorder %s1046_s14, 9  ;;  %s835_s18 = smul.u32 100, %s1131_s25 }
  0x24   : > { %s832_s20 = smul.u32 1600, %s1042_s13  ;;  %s153_s7 = scalar_lea.sflag [#allocation6], %s1131_s25 }
  0x25   : > { %p1157_p2 = pnand %p827_p0, %p171_p12  ;;  %s156_s30 = scalar_lea.vmem [#allocation5], %s835_s18 }
  0x26   : > { %s164_s29 = scalar_lea.hbm %s1371_s1, %s832_s20  ;;  %s166_s4 = sshll.u32 %s156_s30, 4  ;;  %s167_s4 = int_to_ptr.vmem [resolvable:$true] %s166_s4 }
  0x27   : > { %s947_s8 = scalar_lea.vmem %s167_s4, 1600  ;;  %s1049_s3 = smov [#allocation5]  }
  0x28   : > { %p948_p3 = scmp.ne.s32.totalorder %s167_s4, %s947_s8  ;;  %s952_s5 = sshll.u32 %s1049_s3, 4  ;;  %s953_s5 = int_to_ptr.vmem [resolvable:$false] %s952_s5 }
  0x29   : > { %s954_s6 = scalar_lea.vmem %s953_s5, 3200  ;;  %p955_p0 = scmp.lt.s32.totalorder %s167_s4, %s953_s5 }
  0x2a   : > { %p950_p4 = pnand %p948_p3, %p908_p1  ;;  %p956_p6 = scmp.lt.s32.totalorder %s954_s6, %s947_s8 }
  0x2c   : > { %p951_p5 = pneg %p950_p4  ;;  %p957_p7 = por %p956_p6, %p955_p0 }
  0x2e   : > { %p958_p10 = pnand %p957_p7, %p951_p5 }
  0x30   : > { %961 = shalt.err (!%p958_p10)
}
  0x31   : > { %850 = dma.hbm_to_vmem [thread:$0]  (!%p1137_p13), %s164_s29, 1600, %s167_s4, %s153_s7  }
  0x32   : > { %175 = sbr.rel (%p1157_p2) target bundleno = 115 (0x73), region = 28  ;;  %s1174_s25 = sand.u32 (!%p1157_p2), 1, %s1030_s10  }
  0x33   : > { %s836_s15 = smul.u32 (!%p1157_p2), 50, %s1174_s25  ;;  %s178_s16 = scalar_lea.sflag (!%p1157_p2), [#allocation3], %s1174_s25 }
  0x35   : > { %s1178_s18 = scalar_lea.vmem (!%p1157_p2), [#allocation2], %s836_s15 }
  0x37   : > { %1013 = dma.done.wait (%p1114_p8), %s178_s16, 800  }
  0x38   : > { %1015 = vsyncadd (%p1114_p8), %s178_s16, 4294966496  ;;  %s837_s28 = smul.u32 100, %s1174_s25  ;;  %s187_s19 = scalar_lea.sflag [#allocation6], %s1174_s25 }
  0x3a   : > { %s1188_s20 = scalar_lea.vmem [#allocation5], %s837_s28 }
  0x3b   : > { %1017 = dma.done.wait (%p1114_p8), %s187_s19, 1600  }
  0x3c   : > { %1019 = vsyncadd (%p1114_p8), %s187_s19, 4294965696  ;;  %v246_v0 = vlaneseq  ;;  %v1050_v1 = vmov 1983009808   ;;  %v232_v13 = vld [vmem:[%s1178_s18] sm:$0xff]  ;;  %v233_v19 = vld [vmem:[%s1178_s18 + $0x8] sm:$0xff]  ;;  %s1248_s21 = scalar_lea.vmem [#allocation7], %s837_s28 }
  0x3d   : > { %v449_v2 = vunpack.c.l.s4 %v1050_v1  ;;  %v234_v36 = vld [vmem:[%s1178_s18 + $0x10] sm:$0xff]  ;;  %v235_v60 = vld [vmem:[%s1178_s18 + $0x18] sm:$0xff]  ;;  %s833_s26 = smul.u32 1600, %s1038_s12  ;;  %s714_s27 = sshll.u32 %s1248_s21, 4  ;;  %s715_s27 = int_to_ptr.vmem [resolvable:$true] %s714_s27 }
  0x3e   : > { %v247_v3 = vshrl.u32 %v246_v0, 7  ;;  %v219_v37 = vld [vmem:[%s1188_s20] sm:$0xff]  ;;  %v220_v43 = vld [vmem:[%s1188_s20 + $0x8] sm:$0xff]  ;;  %v221_v52 = vld [vmem:[%s1188_s20 + $0x10] sm:$0xff]  ;;  %s698_s12 = scalar_lea.sflag [#allocation4], %s1174_s25  ;;  %s962_s7 = scalar_lea.vmem %s715_s27, 1600 }
  0x3f   : > { %v450_v4 = vunpack.c.0.s8 %v449_v2  ;;  %v222_v2 = vld [vmem:[%s1188_s20 + $0x18] sm:$0xff]  ;;  %s1327_s4 = scalar_lea.hbm %s1372_s2, %s833_s26  ;;  %p963_p8 = scmp.ne.s32.totalorder %s715_s27, %s962_s7 }
  0x40   : > { %v1194_v5 = vsub.s32 0, %v247_v3  ;;  %v1196_v6 = vsub.s32 1, %v247_v3  ;;  %v1198_v7 = vsub.s32 2, %v247_v3  ;;  %v1200_v8 = vsub.s32 3, %v247_v3  ;;  %s1051_s8 = smov [#allocation7]  }
  0x41   : > { %v1202_v9 = vsub.s32 4, %v247_v3  ;;  %v1204_v10 = vsub.s32 5, %v247_v3  ;;  %v1206_v11 = vsub.s32 6, %v247_v3  ;;  %v1208_v12 = vsub.s32 7, %v247_v3  ;;  %p964_p13 = pnand %p963_p8, %p1118_p9  ;;  %s966_s3 = sshll.u32 %s1051_s8, 4  ;;  %s967_s3 = int_to_ptr.vmem [resolvable:$false] %s966_s3 }
  0x42   : > { %v1211_v14 = vsub.s32 %v450_v4, %v247_v3  ;;  %v249_v15 = vrot.slane %v232_v13, %v1194_v5  ;;  %v253_v16 = vrot.slane %v232_v13, %v1196_v6  ;;  %v257_v17 = vrot.slane %v232_v13, %v1198_v7  ;;  %s968_s5 = scalar_lea.vmem %s967_s3, 3200  ;;  %p969_p12 = scmp.lt.s32.totalorder %s715_s27, %s967_s3 }
  0x43   : > { %v261_v18 = vrot.slane %v232_v13, %v1200_v8  ;;  %v265_v20 = vrot.slane %v232_v13, %v1202_v9  ;;  %v269_v21 = vrot.slane %v232_v13, %v1204_v10  ;;  %v273_v22 = vrot.slane %v232_v13, %v1206_v11  ;;  %p965_p1 = pneg %p964_p13  ;;  %p970_p2 = scmp.lt.s32.totalorder %s968_s5, %s962_s7 }
  0x44   : > { %v277_v23 = vrot.slane %v232_v13, %v1208_v12  ;;  %v446_v24 = vcombine.low %v249_v15, %v253_v16  ;;  %v281_v26 = vrot.slane %v233_v19, %v1194_v5  ;;  %v285_v27 = vrot.slane %v233_v19, %v1196_v6 }
  0x45   : > { %v447_v25 = vcombine.low %v257_v17, %v261_v18  ;;  %v463_v28 = vcombine.low %v265_v20, %v269_v21  ;;  %v289_v30 = vrot.slane %v233_v19, %v1198_v7  ;;  %v293_v31 = vrot.slane %v233_v19, %v1200_v8  ;;  %p971_p3 = por %p970_p2, %p969_p12 }
  0x46   : > { %v464_v29 = vcombine.low %v273_v22, %v277_v23  ;;  %v454_v32 = vrot.slane %v446_v24, %v1211_v14  ;;  %v480_v34 = vcombine.low %v281_v26, %v285_v27  ;;  %v297_v35 = vrot.slane %v233_v19, %v1202_v9  ;;  %v236_v23 = vld [vmem:[%s1178_s18 + $0x20] sm:$0xff] }
  0x47   : > { %v461_v33 = vrot.slane %v447_v25, %v1211_v14  ;;  %v471_v38 = vrot.slane %v463_v28, %v1211_v14  ;;  %v481_v40 = vcombine.low %v289_v30, %v293_v31  ;;  %v301_v41 = vrot.slane %v233_v19, %v1204_v10  ;;  %v223_v25 = vld [vmem:[%s1188_s20 + $0x20] sm:$0xff]  ;;  %p972_p4 = pnand %p971_p3, %p965_p1 }
  0x48   : > { %v478_v39 = vrot.slane %v464_v29, %v1211_v14  ;;  %v488_v44 = vrot.slane %v480_v34, %v1211_v14  ;;  %v305_v45 = vrot.slane %v233_v19, %v1206_v11  ;;  %v309_v46 = vrot.slane %v233_v19, %v1208_v12 }
  0x49   : > { %v462_v42 = vcombine.low %v454_v32, %v461_v33  ;;  %v495_v48 = vrot.slane %v481_v40, %v1211_v14  ;;  %v497_v49 = vcombine.low %v297_v35, %v301_v41  ;;  %v313_v50 = vrot.slane %v234_v36, %v1194_v5  ;;  %v224_v33 = vld [vmem:[%s1188_s20 + $0x28] sm:$0xff] }
  0x4a   : > { %v479_v47 = vcombine.low %v471_v38, %v478_v39  ;;  %v498_v53 = vcombine.low %v305_v45, %v309_v46  ;;  %v317_v54 = vrot.slane %v234_v36, %v1196_v6  ;;  %v321_v55 = vrot.slane %v234_v36, %v1198_v7  ;;  %v237_v46 = vld [vmem:[%s1178_s18 + $0x28] sm:$0xff] }
  0x4b   : > { %v671_v51 = vadd.f32 %v462_v42, %v219_v37  ;;  %v496_v57 = vcombine.low %v488_v44, %v495_v48  ;;  %v505_v58 = vrot.slane %v497_v49, %v1211_v14  ;;  %v325_v59 = vrot.slane %v234_v36, %v1200_v8  ;;  %v225_v48 = vld [vmem:[%s1188_s20 + $0x30] sm:$0xff] }
  0x4c   : > { %v672_v56 = vadd.f32 %v479_v47, %v220_v43  ;;  %v512_v61 = vrot.slane %v498_v53, %v1211_v14  ;;  %v514_v62 = vcombine.low %v313_v50, %v317_v54  ;;  %v329_v63 = vrot.slane %v234_v36, %v1202_v9 }
  0x4d   : > { %684 = vst [vmem:[%s1248_s21] sm:$0xff] %v671_v51  ;;  %v333_v0 = vrot.slane %v234_v36, %v1204_v10  ;;  %v673_v1 = vadd.f32 %v496_v57, %v221_v52  ;;  %v515_v3 = vcombine.low %v321_v55, %v325_v59  ;;  %v337_v4 = vrot.slane %v234_v36, %v1206_v11 }
  0x4e   : > { %685 = vst [vmem:[%s1248_s21 + $0x8] sm:$0xff] %v672_v56  ;;  %v341_v13 = vrot.slane %v234_v36, %v1208_v12  ;;  %v513_v15 = vcombine.low %v505_v58, %v512_v61  ;;  %v522_v16 = vrot.slane %v514_v62, %v1211_v14  ;;  %v345_v18 = vrot.slane %v235_v60, %v1194_v5  ;;  %v226_v56 = vld [vmem:[%s1188_s20 + $0x38] sm:$0xff] }
  0x4f   : > { %v531_v17 = vcombine.low %v329_v63, %v333_v0  ;;  %686 = vst [vmem:[%s1248_s21 + $0x10] sm:$0xff] %v673_v1  ;;  %v529_v19 = vrot.slane %v515_v3, %v1211_v14  ;;  %v349_v21 = vrot.slane %v235_v60, %v1196_v6  ;;  %v353_v22 = vrot.slane %v235_v60, %v1198_v7 }
  0x50   : > { %v532_v20 = vcombine.low %v337_v4, %v341_v13  ;;  %v674_v24 = vadd.f32 %v513_v15, %v222_v2  ;;  %v357_v27 = vrot.slane %v235_v60, %v1200_v8  ;;  %v361_v28 = vrot.slane %v235_v60, %v1202_v9  ;;  %v238_v13 = vld [vmem:[%s1178_s18 + $0x30] sm:$0x3] }
  0x51   : > { %v539_v26 = vrot.slane %v531_v17, %v1211_v14  ;;  %v530_v29 = vcombine.low %v522_v16, %v529_v19  ;;  %v548_v31 = vcombine.low %v345_v18, %v349_v21  ;;  %v365_v32 = vrot.slane %v235_v60, %v1204_v10  ;;  %v227_v16 = vld [vmem:[%s1188_s20 + $0x40] sm:$0xff] }
  0x52   : > { %v546_v30 = vrot.slane %v532_v20, %v1211_v14  ;;  %687 = vst [vmem:[%s1248_s21 + $0x18] sm:$0xff] %v674_v24  ;;  %v549_v34 = vcombine.low %v353_v22, %v357_v27  ;;  %v369_v35 = vrot.slane %v235_v60, %v1206_v11  ;;  %v373_v36 = vrot.slane %v235_v60, %v1208_v12 }
  0x53   : > { %v377_v37 = vrot.slane %v236_v23, %v1194_v5  ;;  %v675_v38 = vadd.f32 %v530_v29, %v223_v25  ;;  %v556_v40 = vrot.slane %v548_v31, %v1211_v14  ;;  %v565_v41 = vcombine.low %v361_v28, %v365_v32 }
  0x54   : > { %v547_v39 = vcombine.low %v539_v26, %v546_v30  ;;  %v563_v42 = vrot.slane %v549_v34, %v1211_v14  ;;  %v566_v43 = vcombine.low %v369_v35, %v373_v36  ;;  %v381_v44 = vrot.slane %v236_v23, %v1196_v6  ;;  %v230_v35 = vld [vmem:[%s1188_s20 + $0x58] sm:$0xff]  ;;  %v231_v36 = vld [vmem:[%s1188_s20 + $0x60] sm:$0xf] }
  0x55   : > { %v385_v45 = vrot.slane %v236_v23, %v1198_v7  ;;  %688 = vst [vmem:[%s1248_s21 + $0x20] sm:$0xff] %v675_v38  ;;  %v573_v49 = vrot.slane %v565_v41, %v1211_v14  ;;  %v389_v50 = vrot.slane %v236_v23, %v1200_v8  ;;  %v393_v51 = vrot.slane %v236_v23, %v1202_v9 }
  0x56   : > { %v676_v47 = vadd.f32 %v547_v39, %v224_v33  ;;  %v564_v52 = vcombine.low %v556_v40, %v563_v42  ;;  %v580_v53 = vrot.slane %v566_v43, %v1211_v14  ;;  %v582_v54 = vcombine.low %v377_v37, %v381_v44 }
  0x57   : > { %v397_v55 = vrot.slane %v236_v23, %v1204_v10  ;;  %v583_v57 = vcombine.low %v385_v45, %v389_v50  ;;  %v401_v58 = vrot.slane %v236_v23, %v1206_v11  ;;  %v405_v59 = vrot.slane %v236_v23, %v1208_v12 }
  0x58   : > { %689 = vst [vmem:[%s1248_s21 + $0x28] sm:$0xff] %v676_v47  ;;  %v409_v60 = vrot.slane %v237_v46, %v1194_v5  ;;  %v677_v61 = vadd.f32 %v564_v52, %v225_v48  ;;  %v581_v62 = vcombine.low %v573_v49, %v580_v53  ;;  %v590_v63 = vrot.slane %v582_v54, %v1211_v14 }
  0x59   : > { %v599_v0 = vcombine.low %v393_v51, %v397_v55  ;;  %v597_v1 = vrot.slane %v583_v57, %v1211_v14  ;;  %v600_v2 = vcombine.low %v401_v58, %v405_v59  ;;  %v413_v3 = vrot.slane %v237_v46, %v1196_v6 }
  0x5a   : > { %v417_v4 = vrot.slane %v237_v46, %v1198_v7  ;;  %690 = vst [vmem:[%s1248_s21 + $0x30] sm:$0xff] %v677_v61  ;;  %v678_v15 = vadd.f32 %v581_v62, %v226_v56  ;;  %v421_v18 = vrot.slane %v237_v46, %v1200_v8  ;;  %v425_v19 = vrot.slane %v237_v46, %v1202_v9  ;;  %v228_v7 = vld [vmem:[%s1188_s20 + $0x48] sm:$0xff] }
  0x5b   : > { %v607_v17 = vrot.slane %v599_v0, %v1211_v14  ;;  %v598_v20 = vcombine.low %v590_v63, %v597_v1  ;;  %v614_v21 = vrot.slane %v600_v2, %v1211_v14  ;;  %v616_v22 = vcombine.low %v409_v60, %v413_v3 }
  0x5c   : > { %v429_v23 = vrot.slane %v237_v46, %v1204_v10  ;;  %691 = vst [vmem:[%s1248_s21 + $0x38] sm:$0xff] %v678_v15  ;;  %v617_v24 = vcombine.low %v417_v4, %v421_v18  ;;  %v433_v25 = vrot.slane %v237_v46, %v1206_v11  ;;  %v437_v26 = vrot.slane %v237_v46, %v1208_v12  ;;  %v229_v12 = vld [vmem:[%s1188_s20 + $0x50] sm:$0xff] }
  0x5d   : > { %v441_v8 = vrot.slane %v238_v13, %v1194_v5  ;;  %v679_v9 = vadd.f32 %v598_v20, %v227_v16  ;;  %v615_v27 = vcombine.low %v607_v17, %v614_v21  ;;  %v624_v28 = vrot.slane %v616_v22, %v1211_v14 }
  0x5e   : > { %v633_v10 = vcombine.low %v425_v19, %v429_v23  ;;  %v631_v29 = vrot.slane %v617_v24, %v1211_v14  ;;  %v634_v30 = vcombine.low %v433_v25, %v437_v26  ;;  %v445_v31 = vrot.slane %v238_v13, %v1196_v6 }
  0x5f   : > { %692 = vst [vmem:[%s1248_s21 + $0x40] sm:$0xff] %v679_v9  ;;  %v680_v11 = vadd.f32 %v615_v27, %v228_v7 }
  0x60   : > { %v641_v5 = vrot.slane %v633_v10, %v1211_v14  ;;  %v632_v32 = vcombine.low %v624_v28, %v631_v29  ;;  %v648_v33 = vrot.slane %v634_v30, %v1211_v14  ;;  %v650_v34 = vcombine.low %v441_v8, %v445_v31 }
  0x61   : > { %693 = vst [vmem:[%s1248_s21 + $0x48] sm:$0xff] %v680_v11 }
  0x62   : > { %v681_v6 = vadd.f32 %v632_v32, %v229_v12  ;;  %v649_v37 = vcombine.low %v641_v5, %v648_v33  ;;  %v657_v38 = vrot.slane %v650_v34, %v1211_v14 }
  0x64   : > { %694 = vst [vmem:[%s1248_s21 + $0x50] sm:$0xff] %v681_v6  ;;  %v682_v39 = vadd.f32 %v649_v37, %v230_v35  ;;  %v683_v40 = vadd.f32 %v657_v38, %v231_v36 }
  0x66   : > { %695 = vst [vmem:[%s1248_s21 + $0x58] sm:$0xff] %v682_v39  ;;  %696 = vst [vmem:[%s1248_s21 + $0x60] sm:$0xf] %v683_v40 }
  0x67   : > { %975 = shalt.err (!%p972_p4)
}
  0x68   : > { %s976_s6 = scalar_lea.hbm %s1327_s4, 1600  ;;  %s980_s16 = scalar_lea.hbm %s1372_s2, 12800 }
  0x69   : > { %p977_p5 = scmp.ne.s32.totalorder %s1327_s4, %s976_s6  ;;  %p981_p7 = scmp.lt.s32.totalorder %s1327_s4, %s1372_s2 }
  0x6a   : > { %p982_p10 = scmp.lt.s32.totalorder %s980_s16, %s976_s6 }
  0x6b   : > { %p978_p0 = pnand %p977_p5, %p1118_p9 }
  0x6c   : > { %p983_p8 = por %p982_p10, %p981_p7 }
  0x6d   : > { %p979_p6 = pneg %p978_p0 }
  0x6f   : > { %p984_p13 = pnand %p983_p8, %p979_p6 }
  0x71   : > { %987 = shalt.err (!%p984_p13)
}
  0x72   : > { %842 = dma.vmem_to_hbm [thread:$0]  (%p1118_p9), %s715_s27, 1600, %s1327_s4, %s698_s12  }
  0x73 PF: > { %p856_p1 = scmp.ge.s32.totalorder %s1046_s14, 2  ;;  %s726_s19 = sand.u32 1, %s1026_s9  }
  0x74   : > { %s727_s20 = scalar_lea.sflag [#allocation4], %s726_s19 }
  0x75   : > { %p852_p12 = pnand %p856_p1, %p1125_p11 }
  0x77   : > { %p853_p2 = pneg %p852_p12 }
  0x79   : > { %1021 = dma.done.wait (%p853_p2), %s727_s20, 1600  }
  0x7a   : > { %1023 = vsyncadd (%p853_p2), %s727_s20, 4294965696  ;;  %s21_s14 = sadd.s32 1, %s1046_s14   ;;  %s1379_s9 = smov %s1030_s10 }
  0x7b   : > { %p18_p3 = scmp.ge.s32.totalorder %s21_s14, 10   ;;  %s1380_s10 = smov %s1034_s11 }
  0x7c   : > { %s1381_s11 = smov %s1123_s23  ;;  %s1382_s12 = smov %s1042_s13 }
  0x7d   : > { %s1383_s13 = smov %s1385_s17  ;;  %20 = sbr.rel (!%p18_p3) target bundleno = 8 (0x8), region = 86 }
  0x82   :  { %732 = vsyncpa [#allocation3], 1 }
  0x83   :  { %734 = vsyncpa [#allocation3 + $0x1], 1 }
  0x84   :  { %735 = vsyncpa [#allocation6], 1 }
  0x85   :  { %737 = vsyncpa [#allocation6 + $0x1], 1 }
  0x86   :  { %738 = vsyncpa [#allocation4], 1 }
  0x87   :  { %740 = vsyncpa [#allocation4 + $0x1], 1 }

</bundles_post_ra>
